<compile_context>
chip_gen: v5e
topology: v5e:2x2
jax: 0.10.0
libtpu: 0.0.40
codegen_flags: <defaults>
</compile_context>

<pallas_src>
import jax
import jax.numpy as jnp
from jax.experimental import pallas as pl
from jax.experimental.pallas import tpu as pltpu

# ----------------------------- config -------------------------------------
B = 2          # batch
C = 4          # image channels
H = W = 16     # spatial
P = 8          # patch size
T = (H // P) * (W // P)      # tokens per camera = 4
PATCH_DIM = C * P * P        # 256
EMBED_DIM = 32               # features.embed_dim
ODIM = 8                     # proprioceptive obs dim
TOKEN_DIM = 64               # post_proc linear projection output
N_CAMS = 2
N_TOKENS = N_CAMS * T + 1    # +1 for the 'add_token' obs token (= 9)
LN_EPS = 1e-5

R_CAM = B * T                # stacked rows per camera        (8)
R_ALL = N_CAMS * R_CAM + B   # total stacked token rows       (18)
W_ROWS = N_CAMS * PATCH_DIM + ODIM   # packed fused-weight rows (520)


# ----------------------------- Pallas kernel -------------------------------
def _tokenize_kernel(p0_ref, p1_ref, obs_ref, w_ref, v_ref, out_ref, y_scr):
    """Fused embed+projection (one matmul per path) -> stacked LayerNorm -> output.

    w_ref : (W_ROWS, TOKEN_DIM)  rows [0,256)=cam0 fused W, [256,512)=cam1, [512,520)=obs
    v_ref : (R_ALL+2, TOKEN_DIM) rows [0,18)=fused per-row bias, 18=gamma, 19=beta
    y_scr : (R_ALL, TOKEN_DIM)   VMEM scratch holding the stacked token block
    out_ref: (B, N_TOKENS, TOKEN_DIM) written directly in the module's token order
    """
    # --- one fused MXU matmul per path (embed Linear folded with post_proc Linear) ---
    y_scr[0:R_CAM, :] = jnp.dot(
        p0_ref[...], w_ref[0:PATCH_DIM, :], preferred_element_type=jnp.float32)
    y_scr[R_CAM:2 * R_CAM, :] = jnp.dot(
        p1_ref[...], w_ref[PATCH_DIM:2 * PATCH_DIM, :],
        preferred_element_type=jnp.float32)
    y_scr[2 * R_CAM:R_ALL, :] = jnp.dot(
        obs_ref[...], w_ref[2 * PATCH_DIM:2 * PATCH_DIM + ODIM, :],
        preferred_element_type=jnp.float32)

    # --- single bias add + single LayerNorm over the stacked 18-row block ---
    y = y_scr[...] + v_ref[0:R_ALL, :]
    gamma = v_ref[R_ALL:R_ALL + 1, :]
    beta = v_ref[R_ALL + 1:R_ALL + 2, :]
    mu = jnp.mean(y, axis=-1, keepdims=True)
    d = y - mu
    var = jnp.mean(d * d, axis=-1, keepdims=True)
    yn = d * jax.lax.rsqrt(var + LN_EPS) * gamma + beta

    # --- write directly in final token order: per batch [cam0 t0..3, cam1 t0..3, obs] ---
    for b in range(B):                                   # B=2, unrolled at trace time
        out_ref[b, 0:T, :] = yn[b * T:(b + 1) * T, :]
        out_ref[b, T:2 * T, :] = yn[R_CAM + b * T:R_CAM + (b + 1) * T, :]
        out_ref[b, 2 * T:2 * T + 1, :] = yn[2 * R_CAM + b:2 * R_CAM + b + 1, :]


def _run_tokenize(p0, p1, obs, params):
    vmem = pl.BlockSpec(memory_space=pltpu.MemorySpace.VMEM)
    return pl.pallas_call(
        _tokenize_kernel,
        out_shape=jax.ShapeDtypeStruct((B, N_TOKENS, TOKEN_DIM), jnp.float32),
        in_specs=[vmem] * 5,
        out_specs=vmem,
        scratch_shapes=[pltpu.VMEM((R_ALL, TOKEN_DIM), jnp.float32)],
    )(p0, p1, obs, params["w_pack"], params["vec_pack"])


# ----------------------------- glue (plain JAX) -----------------------------
def _extract_patches(img_nchw):
    """NCHW image -> [B*T, C*P*P] patch rows (glue, no compute)."""
    b, c, h, w = img_nchw.shape
    x = img_nchw.reshape(b, c, h // P, P, w // P, P)
    x = x.transpose(0, 2, 4, 1, 3, 5)                  # [B, hT, wT, C, P, P]
    return x.reshape(b * (h // P) * (w // P), c * P * P)


def tokenize_obs(imgs, obs, params, flatten=False):
    """Pallas-backed equivalent of BaseAgent.tokenize_obs (eval mode)."""
    p0 = _extract_patches(imgs["cam0"])
    p1 = _extract_patches(imgs["cam1"])
    tokens = _run_tokenize(p0, p1, obs, params)        # (B, N_TOKENS, TOKEN_DIM)
    if flatten:
        return tokens.reshape(B, -1)
    return tokens


def tokenize_obs_reference(imgs, obs, params):
    """Pure-JAX reference (unfused two-linear path) for correctness checking."""
    def path(x2d, w, b):
        e = x2d @ w + b
        y = e @ params["wp"] + params["bp"]
        mu = y.mean(-1, keepdims=True)
        var = ((y - mu) ** 2).mean(-1, keepdims=True)
        return (y - mu) / jnp.sqrt(var + LN_EPS) * params["gamma"] + params["beta"]

    y0 = path(_extract_patches(imgs["cam0"]), params["w0"], params["b0"])
    y1 = path(_extract_patches(imgs["cam1"]), params["w1"], params["b1"])
    yo = path(obs, params["wo"], params["bo"])
    return jnp.concatenate(
        [y0.reshape(B, T, TOKEN_DIM), y1.reshape(B, T, TOKEN_DIM), yo[:, None, :]],
        axis=1)


def init_params(key):
    ks = jax.random.split(key, 8)
    s_patch = 1.0 / jnp.sqrt(PATCH_DIM)
    s_obs = 1.0 / jnp.sqrt(ODIM)
    s_proj = 1.0 / jnp.sqrt(EMBED_DIM)
    p = {
        # per-camera patch-embed Linears (not shared: share_cam_features=False)
        "w0": jax.random.normal(ks[0], (PATCH_DIM, EMBED_DIM), jnp.float32) * s_patch,
        "b0": jax.random.normal(ks[1], (1, EMBED_DIM), jnp.float32) * 0.01,
        "w1": jax.random.normal(ks[2], (PATCH_DIM, EMBED_DIM), jnp.float32) * s_patch,
        "b1": jax.random.normal(ks[3], (1, EMBED_DIM), jnp.float32) * 0.01,
        # obs_proc Linear(odim -> embed_dim)  (Dropout(0.2) is identity in eval)
        "wo": jax.random.normal(ks[4], (ODIM, EMBED_DIM), jnp.float32) * s_obs,
        "bo": jax.random.normal(ks[5], (1, EMBED_DIM), jnp.float32) * 0.01,
        # post_proc Linear(embed_dim -> token_dim)
        "wp": jax.random.normal(ks[6], (EMBED_DIM, TOKEN_DIM), jnp.float32) * s_proj,
        "bp": jax.random.normal(ks[7], (1, TOKEN_DIM), jnp.float32) * 0.01,
        # LayerNorm(token_dim) defaults
        "gamma": jnp.ones((1, TOKEN_DIM), jnp.float32),
        "beta": jnp.zeros((1, TOKEN_DIM), jnp.float32),
    }

    # ---- one-time weight fusion + ref packing (perf review items 1 & 4) ----
    w0f = p["w0"] @ p["wp"]                       # (PATCH_DIM, TOKEN_DIM)
    w1f = p["w1"] @ p["wp"]
    wof = p["wo"] @ p["wp"]                       # (ODIM, TOKEN_DIM)
    b0f = p["b0"] @ p["wp"] + p["bp"]             # (1, TOKEN_DIM)
    b1f = p["b1"] @ p["wp"] + p["bp"]
    bof = p["bo"] @ p["wp"] + p["bp"]
    p["w_pack"] = jnp.concatenate([w0f, w1f, wof], axis=0)        # (W_ROWS, TOKEN_DIM)
    bias_all = jnp.concatenate(
        [jnp.broadcast_to(b0f, (R_CAM, TOKEN_DIM)),
         jnp.broadcast_to(b1f, (R_CAM, TOKEN_DIM)),
         jnp.broadcast_to(bof, (B, TOKEN_DIM))], axis=0)          # (R_ALL, TOKEN_DIM)
    p["vec_pack"] = jnp.concatenate(
        [bias_all, p["gamma"], p["beta"]], axis=0)                # (R_ALL+2, TOKEN_DIM)
    return p


if __name__ == "__main__":
    key = jax.random.PRNGKey(0)
    k_img0, k_img1, k_obs, k_param = jax.random.split(key, 4)

    imgs = {
        "cam0": jax.random.normal(k_img0, (B, C, H, W), jnp.float32),
        "cam1": jax.random.normal(k_img1, (B, C, H, W), jnp.float32),
    }
    obs = jax.random.normal(k_obs, (B, ODIM), jnp.float32)
    params = init_params(k_param)

    tokenize_jit = jax.jit(lambda im, ob, pa: tokenize_obs(im, ob, pa))
    tokens = jax.block_until_ready(tokenize_jit(imgs, obs, params))

    assert tokens.shape == (B, N_TOKENS, TOKEN_DIM), tokens.shape

    ref = jax.block_until_ready(tokenize_obs_reference(imgs, obs, params))
    assert jnp.allclose(tokens, ref, atol=1e-4, rtol=1e-4), \
        float(jnp.max(jnp.abs(tokens - ref)))

    print("KERNEL_OK")
</pallas_src>

<mosaic_0001>
module attributes {stable_mosaic.version = 11 : i64} {
  func.func @_tokenize_kernel(%arg0: memref<8x256xf32, #tpu.memory_space<vmem>>, %arg1: memref<8x256xf32, #tpu.memory_space<vmem>>, %arg2: memref<2x8xf32, #tpu.memory_space<vmem>>, %arg3: memref<520x64xf32, #tpu.memory_space<vmem>>, %arg4: memref<20x64xf32, #tpu.memory_space<vmem>>, %arg5: memref<2x9x64xf32, #tpu.memory_space<vmem>>, %arg6: memref<18x64xf32, #tpu.memory_space<vmem>>) attributes {dimension_semantics = [], scalar_prefetch = 0 : i64, scratch_operands = 1 : i64, tpu.core_type = #tpu.core_type<tc>} {
    %c0 = arith.constant 0 : index
    %c0_0 = arith.constant 0 : index
    %0 = vector.load %arg0[%c0, %c0_0] : memref<8x256xf32, #tpu.memory_space<vmem>>, vector<8x256xf32>
    %c0_1 = arith.constant 0 : index
    %c0_2 = arith.constant 0 : index
    %1 = vector.load %arg3[%c0_1, %c0_2] : memref<520x64xf32, #tpu.memory_space<vmem>>, vector<256x64xf32>
    %cst = arith.constant dense<0.000000e+00> : vector<8x64xf32>
    %2 = tpu.matmul %0, %1, %cst {dimension_numbers = #tpu.dot_dimension_numbers<[1], [0], [0], [1], [0, 0, 1, 1], [], []>} : vector<8x256xf32>, vector<256x64xf32>, vector<8x64xf32> -> vector<8x64xf32>
    %c0_3 = arith.constant 0 : index
    %c0_4 = arith.constant 0 : index
    %3 = vector.load %arg6[%c0_3, %c0_4] : memref<18x64xf32, #tpu.memory_space<vmem>>, vector<8x64xf32>
    tpu.vector_store %arg6[%c0_3, %c0_4], %2 {strides = array<i32>} : memref<18x64xf32, #tpu.memory_space<vmem>>, vector<8x64xf32>,
    %c0_5 = arith.constant 0 : index
    %c0_6 = arith.constant 0 : index
    %4 = vector.load %arg1[%c0_5, %c0_6] : memref<8x256xf32, #tpu.memory_space<vmem>>, vector<8x256xf32>
    %c256 = arith.constant 256 : index
    %c0_7 = arith.constant 0 : index
    %5 = vector.load %arg3[%c256, %c0_7] : memref<520x64xf32, #tpu.memory_space<vmem>>, vector<256x64xf32>
    %cst_8 = arith.constant dense<0.000000e+00> : vector<8x64xf32>
    %6 = tpu.matmul %4, %5, %cst_8 {dimension_numbers = #tpu.dot_dimension_numbers<[1], [0], [0], [1], [0, 0, 1, 1], [], []>} : vector<8x256xf32>, vector<256x64xf32>, vector<8x64xf32> -> vector<8x64xf32>
    %c8 = arith.constant 8 : index
    %c0_9 = arith.constant 0 : index
    %7 = vector.load %arg6[%c8, %c0_9] : memref<18x64xf32, #tpu.memory_space<vmem>>, vector<8x64xf32>
    tpu.vector_store %arg6[%c8, %c0_9], %6 {strides = array<i32>} : memref<18x64xf32, #tpu.memory_space<vmem>>, vector<8x64xf32>,
    %c0_10 = arith.constant 0 : index
    %c0_11 = arith.constant 0 : index
    %8 = vector.load %arg2[%c0_10, %c0_11] : memref<2x8xf32, #tpu.memory_space<vmem>>, vector<2x8xf32>
    %c512 = arith.constant 512 : index
    %c0_12 = arith.constant 0 : index
    %9 = vector.load %arg3[%c512, %c0_12] : memref<520x64xf32, #tpu.memory_space<vmem>>, vector<8x64xf32>
    %cst_13 = arith.constant dense<0.000000e+00> : vector<2x64xf32>
    %10 = tpu.matmul %8, %9, %cst_13 {dimension_numbers = #tpu.dot_dimension_numbers<[1], [0], [0], [1], [0, 0, 1, 1], [], []>} : vector<2x8xf32>, vector<8x64xf32>, vector<2x64xf32> -> vector<2x64xf32>
    %c16 = arith.constant 16 : index
    %c0_14 = arith.constant 0 : index
    %11 = vector.load %arg6[%c16, %c0_14] : memref<18x64xf32, #tpu.memory_space<vmem>>, vector<2x64xf32>
    tpu.vector_store %arg6[%c16, %c0_14], %10 {strides = array<i32>} : memref<18x64xf32, #tpu.memory_space<vmem>>, vector<2x64xf32>,
    %c0_15 = arith.constant 0 : index
    %c0_16 = arith.constant 0 : index
    %12 = vector.load %arg6[%c0_15, %c0_16] : memref<18x64xf32, #tpu.memory_space<vmem>>, vector<18x64xf32>
    %c0_17 = arith.constant 0 : index
    %c0_18 = arith.constant 0 : index
    %13 = vector.load %arg4[%c0_17, %c0_18] : memref<20x64xf32, #tpu.memory_space<vmem>>, vector<18x64xf32>
    %14 = arith.addf %12, %13 : vector<18x64xf32>
    %c18 = arith.constant 18 : index
    %c0_19 = arith.constant 0 : index
    %15 = vector.load %arg4[%c18, %c0_19] : memref<20x64xf32, #tpu.memory_space<vmem>>, vector<1x64xf32>
    %c19 = arith.constant 19 : index
    %c0_20 = arith.constant 0 : index
    %16 = vector.load %arg4[%c19, %c0_20] : memref<20x64xf32, #tpu.memory_space<vmem>>, vector<1x64xf32>
    %cst_21 = arith.constant dense<0.000000e+00> : vector<18xf32>
    %17 = vector.multi_reduction <add>, %14, %cst_21 [1] : vector<18x64xf32> to vector<18xf32>
    %18 = vector.shape_cast %17 : vector<18xf32> to vector<18x1xf32>
    %cst_22 = arith.constant 6.400000e+01 : f32
    %19 = vector.broadcast %cst_22 : f32 to vector<18x1xf32>
    %20 = arith.divf %18, %19 : vector<18x1xf32>
    %21 = vector.broadcast %20 : vector<18x1xf32> to vector<18x64xf32>
    %22 = arith.subf %14, %21 : vector<18x64xf32>
    %23 = arith.mulf %22, %22 : vector<18x64xf32>
    %cst_23 = arith.constant dense<0.000000e+00> : vector<18xf32>
    %24 = vector.multi_reduction <add>, %23, %cst_23 [1] : vector<18x64xf32> to vector<18xf32>
    %25 = vector.shape_cast %24 : vector<18xf32> to vector<18x1xf32>
    %cst_24 = arith.constant 6.400000e+01 : f32
    %26 = vector.broadcast %cst_24 : f32 to vector<18x1xf32>
    %27 = arith.divf %25, %26 : vector<18x1xf32>
    %cst_25 = arith.constant 9.99999974E-6 : f32
    %28 = vector.broadcast %cst_25 : f32 to vector<18x1xf32>
    %29 = arith.addf %27, %28 : vector<18x1xf32>
    %30 = math.rsqrt %29 : vector<18x1xf32>
    %31 = vector.broadcast %30 : vector<18x1xf32> to vector<18x64xf32>
    %32 = arith.mulf %22, %31 : vector<18x64xf32>
    %33 = vector.broadcast %15 : vector<1x64xf32> to vector<18x64xf32>
    %34 = arith.mulf %32, %33 : vector<18x64xf32>
    %35 = vector.broadcast %16 : vector<1x64xf32> to vector<18x64xf32>
    %36 = arith.addf %34, %35 : vector<18x64xf32>
    %37 = vector.extract_strided_slice %36 {offsets = [0, 0], sizes = [4, 64], strides = [1, 1]} : vector<18x64xf32> to vector<4x64xf32>
    %c0_26 = arith.constant 0 : index
    %c0_27 = arith.constant 0 : index
    %c0_28 = arith.constant 0 : index
    %38 = vector.load %arg5[%c0_26, %c0_27, %c0_28] : memref<2x9x64xf32, #tpu.memory_space<vmem>>, vector<1x4x64xf32>
    %39 = vector.shape_cast %38 : vector<1x4x64xf32> to vector<4x64xf32>
    %40 = vector.shape_cast %37 : vector<4x64xf32> to vector<1x4x64xf32>
    tpu.vector_store %arg5[%c0_26, %c0_27, %c0_28], %40 {strides = array<i32>} : memref<2x9x64xf32, #tpu.memory_space<vmem>>, vector<1x4x64xf32>,
    %41 = vector.extract_strided_slice %36 {offsets = [8, 0], sizes = [4, 64], strides = [1, 1]} : vector<18x64xf32> to vector<4x64xf32>
    %c0_29 = arith.constant 0 : index
    %c4 = arith.constant 4 : index
    %c0_30 = arith.constant 0 : index
    %42 = vector.load %arg5[%c0_29, %c4, %c0_30] : memref<2x9x64xf32, #tpu.memory_space<vmem>>, vector<1x4x64xf32>
    %43 = vector.shape_cast %42 : vector<1x4x64xf32> to vector<4x64xf32>
    %44 = vector.shape_cast %41 : vector<4x64xf32> to vector<1x4x64xf32>
    tpu.vector_store %arg5[%c0_29, %c4, %c0_30], %44 {strides = array<i32>} : memref<2x9x64xf32, #tpu.memory_space<vmem>>, vector<1x4x64xf32>,
    %45 = vector.extract_strided_slice %36 {offsets = [16, 0], sizes = [1, 64], strides = [1, 1]} : vector<18x64xf32> to vector<1x64xf32>
    %c0_31 = arith.constant 0 : index
    %c8_32 = arith.constant 8 : index
    %c0_33 = arith.constant 0 : index
    %46 = vector.load %arg5[%c0_31, %c8_32, %c0_33] : memref<2x9x64xf32, #tpu.memory_space<vmem>>, vector<1x1x64xf32>
    %47 = vector.shape_cast %46 : vector<1x1x64xf32> to vector<1x64xf32>
    %48 = vector.shape_cast %45 : vector<1x64xf32> to vector<1x1x64xf32>
    tpu.vector_store %arg5[%c0_31, %c8_32, %c0_33], %48 {strides = array<i32>} : memref<2x9x64xf32, #tpu.memory_space<vmem>>, vector<1x1x64xf32>,
    %49 = vector.extract_strided_slice %36 {offsets = [4, 0], sizes = [4, 64], strides = [1, 1]} : vector<18x64xf32> to vector<4x64xf32>
    %c1 = arith.constant 1 : index
    %c0_34 = arith.constant 0 : index
    %c0_35 = arith.constant 0 : index
    %50 = vector.load %arg5[%c1, %c0_34, %c0_35] : memref<2x9x64xf32, #tpu.memory_space<vmem>>, vector<1x4x64xf32>
    %51 = vector.shape_cast %50 : vector<1x4x64xf32> to vector<4x64xf32>
    %52 = vector.shape_cast %49 : vector<4x64xf32> to vector<1x4x64xf32>
    tpu.vector_store %arg5[%c1, %c0_34, %c0_35], %52 {strides = array<i32>} : memref<2x9x64xf32, #tpu.memory_space<vmem>>, vector<1x4x64xf32>,
    %53 = vector.extract_strided_slice %36 {offsets = [12, 0], sizes = [4, 64], strides = [1, 1]} : vector<18x64xf32> to vector<4x64xf32>
    %c1_36 = arith.constant 1 : index
    %c4_37 = arith.constant 4 : index
    %c0_38 = arith.constant 0 : index
    %54 = vector.load %arg5[%c1_36, %c4_37, %c0_38] : memref<2x9x64xf32, #tpu.memory_space<vmem>>, vector<1x4x64xf32>
    %55 = vector.shape_cast %54 : vector<1x4x64xf32> to vector<4x64xf32>
    %56 = vector.shape_cast %53 : vector<4x64xf32> to vector<1x4x64xf32>
    tpu.vector_store %arg5[%c1_36, %c4_37, %c0_38], %56 {strides = array<i32>} : memref<2x9x64xf32, #tpu.memory_space<vmem>>, vector<1x4x64xf32>,
    %57 = vector.extract_strided_slice %36 {offsets = [17, 0], sizes = [1, 64], strides = [1, 1]} : vector<18x64xf32> to vector<1x64xf32>
    %c1_39 = arith.constant 1 : index
    %c8_40 = arith.constant 8 : index
    %c0_41 = arith.constant 0 : index
    %58 = vector.load %arg5[%c1_39, %c8_40, %c0_41] : memref<2x9x64xf32, #tpu.memory_space<vmem>>, vector<1x1x64xf32>
    %59 = vector.shape_cast %58 : vector<1x1x64xf32> to vector<1x64xf32>
    %60 = vector.shape_cast %57 : vector<1x64xf32> to vector<1x1x64xf32>
    tpu.vector_store %arg5[%c1_39, %c8_40, %c0_41], %60 {strides = array<i32>} : memref<2x9x64xf32, #tpu.memory_space<vmem>>, vector<1x1x64xf32>,
    return
  }
}

</mosaic_0001>

<bundles_post_ra>
// kernel: _lambda_.1
= control target key start
LH: loop header
LB: loop body
LE: loop exit
PB: predicated region body
PF: predicated region fallthrough
CT: control target
= control target key end

     0   :  { %vm173_vm0 = vcmask 64512   ;;  %vm94_vm1 = vcmask 523264   ;;  %vm197_vm2 = vcmask 517120   ;;  %vm291_vm7 = vcmask 519168   ;;  %s613_s3 = inlined_call_operand.vmem [shape: f32[520,64], index: 3, kind: input, shape index: {}]   ;;  %s614_s0 = inlined_call_operand.vmem [shape: f32[8,256], index: 0, kind: input, shape index: {}]   ;;  %s615_s1 = inlined_call_operand.vmem [shape: f32[8,256], index: 1, kind: input, shape index: {}]   ;;  %s616_s2 = inlined_call_operand.vmem [shape: f32[2,8], index: 2, kind: input, shape index: {}]   ;;  %s617_s4 = inlined_call_operand.vmem [shape: f32[20,64], index: 4, kind: input, shape index: {}]   ;;  %s618_s5 = inlined_call_operand.vmem [shape: f32[2,9,64], index: 5, kind: output, shape index: {}]  }
   0x1   :  { %v37_v0 = vld [vmem:[%s613_s3 + $0x78] sm:$0xff]  ;;  %v36_v2 = vld [vmem:[%s613_s3 + $0x70] sm:$0xff]  ;;  %v35_v6 = vld [vmem:[%s613_s3 + $0x68] sm:$0xff]  ;;  %vm297_vm9 = vcmask 523268   ;;  %vm294_vm15 = vcmask 516096  }
   0x2   :  { %v53_v1 = vld [vmem:[%s613_s3 + $0xf8] sm:$0xff]  ;;  %54 = vmatpush.msra.mxu0 %v37_v0  ;;  %v52_v3 = vld [vmem:[%s613_s3 + $0xf0] sm:$0xff]  ;;  %v51_v7 = vld [vmem:[%s613_s3 + $0xe8] sm:$0xff] }
   0x3   :  { %74 = vmatpush.msra.mxu1 %v53_v1  ;;  %v113_v4 = vld [vmem:[%s613_s3 + $0x178] sm:$0xff]  ;;  %v112_v8 = vld [vmem:[%s613_s3 + $0x170] sm:$0xff]  ;;  %v34_v10 = vld [vmem:[%s613_s3 + $0x60] sm:$0xff] }
   0x4   :  { %v129_v5 = vld [vmem:[%s613_s3 + $0x1f8] sm:$0xff]  ;;  %130 = vmatpush.msra.mxu2 %v113_v4  ;;  %55 = vmatpush.msra.mxu0 %v36_v2  ;;  %v128_v9 = vld [vmem:[%s613_s3 + $0x1f0] sm:$0xff]  ;;  %v50_v11 = vld [vmem:[%s613_s3 + $0xe0] sm:$0xff] }
   0x5   :  { %150 = vmatpush.msra.mxu3 %v129_v5  ;;  %75 = vmatpush.msra.mxu1 %v52_v3  ;;  %v111_v12 = vld [vmem:[%s613_s3 + $0x168] sm:$0xff]  ;;  %v110_v14 = vld [vmem:[%s613_s3 + $0x160] sm:$0xff]  ;;  %v33_v16 = vld [vmem:[%s613_s3 + $0x58] sm:$0xff] }
   0x6   :  { %131 = vmatpush.msra.mxu2 %v112_v8  ;;  %v127_v13 = vld [vmem:[%s613_s3 + $0x1e8] sm:$0xff]  ;;  %56 = vmatpush.msra.mxu0 %v35_v6  ;;  %v126_v15 = vld [vmem:[%s613_s3 + $0x1e0] sm:$0xff]  ;;  %v49_v17 = vld [vmem:[%s613_s3 + $0xd8] sm:$0xff] }
   0x7   :  { %151 = vmatpush.msra.mxu3 %v128_v9  ;;  %76 = vmatpush.msra.mxu1 %v51_v7  ;;  %v109_v18 = vld [vmem:[%s613_s3 + $0x158] sm:$0xff]  ;;  %v32_v20 = vld [vmem:[%s613_s3 + $0x50] sm:$0xff]  ;;  %v31_v24 = vld [vmem:[%s613_s3 + $0x48] sm:$0xff] }
   0x8   :  { %132 = vmatpush.msra.mxu2 %v111_v12  ;;  %57 = vmatpush.msra.mxu0 %v34_v10  ;;  %v125_v19 = vld [vmem:[%s613_s3 + $0x1d8] sm:$0xff]  ;;  %v48_v21 = vld [vmem:[%s613_s3 + $0xd0] sm:$0xff]  ;;  %v47_v25 = vld [vmem:[%s613_s3 + $0xc8] sm:$0xff] }
   0x9   :  { %152 = vmatpush.msra.mxu3 %v127_v13  ;;  %77 = vmatpush.msra.mxu1 %v50_v11  ;;  %v108_v22 = vld [vmem:[%s613_s3 + $0x150] sm:$0xff]  ;;  %v107_v26 = vld [vmem:[%s613_s3 + $0x148] sm:$0xff]  ;;  %v30_v28 = vld [vmem:[%s613_s3 + $0x40] sm:$0xff] }
   0xa   :  { %133 = vmatpush.msra.mxu2 %v110_v14  ;;  %58 = vmatpush.msra.mxu0 %v33_v16  ;;  %v124_v23 = vld [vmem:[%s613_s3 + $0x1d0] sm:$0xff]  ;;  %v123_v27 = vld [vmem:[%s613_s3 + $0x1c8] sm:$0xff]  ;;  %v46_v29 = vld [vmem:[%s613_s3 + $0xc0] sm:$0xff] }
   0xb   :  { %153 = vmatpush.msra.mxu3 %v126_v15  ;;  %78 = vmatpush.msra.mxu1 %v49_v17  ;;  %v106_v30 = vld [vmem:[%s613_s3 + $0x140] sm:$0xff]  ;;  %v29_v32 = vld [vmem:[%s613_s3 + $0x38] sm:$0xff]  ;;  %v28_v36 = vld [vmem:[%s613_s3 + $0x30] sm:$0xff] }
   0xc   :  { %134 = vmatpush.msra.mxu2 %v109_v18  ;;  %59 = vmatpush.msra.mxu0 %v32_v20  ;;  %v122_v31 = vld [vmem:[%s613_s3 + $0x1c0] sm:$0xff]  ;;  %v45_v33 = vld [vmem:[%s613_s3 + $0xb8] sm:$0xff]  ;;  %v44_v37 = vld [vmem:[%s613_s3 + $0xb0] sm:$0xff] }
   0xd   :  { %154 = vmatpush.msra.mxu3 %v125_v19  ;;  %79 = vmatpush.msra.mxu1 %v48_v21  ;;  %v105_v34 = vld [vmem:[%s613_s3 + $0x138] sm:$0xff]  ;;  %v104_v38 = vld [vmem:[%s613_s3 + $0x130] sm:$0xff]  ;;  %v27_v40 = vld [vmem:[%s613_s3 + $0x28] sm:$0xff] }
   0xe   :  { %135 = vmatpush.msra.mxu2 %v108_v22  ;;  %60 = vmatpush.msra.mxu0 %v31_v24  ;;  %v121_v35 = vld [vmem:[%s613_s3 + $0x1b8] sm:$0xff]  ;;  %v120_v39 = vld [vmem:[%s613_s3 + $0x1b0] sm:$0xff]  ;;  %v43_v41 = vld [vmem:[%s613_s3 + $0xa8] sm:$0xff] }
   0xf   :  { %155 = vmatpush.msra.mxu3 %v124_v23  ;;  %80 = vmatpush.msra.mxu1 %v47_v25  ;;  %v103_v42 = vld [vmem:[%s613_s3 + $0x128] sm:$0xff]  ;;  %v26_v44 = vld [vmem:[%s613_s3 + $0x20] sm:$0xff]  ;;  %v25_v48 = vld [vmem:[%s613_s3 + $0x18] sm:$0xff]  ;;  %v321_v25 = vmov 64.0  }
  0x10   :  { %136 = vmatpush.msra.mxu2 %v107_v26  ;;  %61 = vmatpush.msra.mxu0 %v30_v28  ;;  %v119_v43 = vld [vmem:[%s613_s3 + $0x1a8] sm:$0xff]  ;;  %v42_v45 = vld [vmem:[%s613_s3 + $0xa0] sm:$0xff]  ;;  %v41_v49 = vld [vmem:[%s613_s3 + $0x98] sm:$0xff]  ;;  %313 = vrcp.f32 %v321_v25 }
  0x11   :  { %156 = vmatpush.msra.mxu3 %v123_v27  ;;  %81 = vmatpush.msra.mxu1 %v46_v29  ;;  %v102_v46 = vld [vmem:[%s613_s3 + $0x120] sm:$0xff]  ;;  %v101_v50 = vld [vmem:[%s613_s3 + $0x118] sm:$0xff]  ;;  %v24_v52 = vld [vmem:[%s613_s3 + $0x10] sm:$0xff] }
  0x12   :  { %137 = vmatpush.msra.mxu2 %v106_v30  ;;  %62 = vmatpush.msra.mxu0 %v29_v32  ;;  %v118_v47 = vld [vmem:[%s613_s3 + $0x1a0] sm:$0xff]  ;;  %v117_v51 = vld [vmem:[%s613_s3 + $0x198] sm:$0xff]  ;;  %v40_v53 = vld [vmem:[%s613_s3 + $0x90] sm:$0xff] }
  0x13   :  { %157 = vmatpush.msra.mxu3 %v122_v31  ;;  %82 = vmatpush.msra.mxu1 %v45_v33  ;;  %v100_v54 = vld [vmem:[%s613_s3 + $0x110] sm:$0xff]  ;;  %v23_v56 = vld [vmem:[%s613_s3 + $0x8] sm:$0xff]  ;;  %v22_v60 = vld [vmem:[%s613_s3] sm:$0xff] }
  0x14   :  { %138 = vmatpush.msra.mxu2 %v105_v34  ;;  %63 = vmatpush.msra.mxu0 %v28_v36  ;;  %v116_v55 = vld [vmem:[%s613_s3 + $0x190] sm:$0xff]  ;;  %v39_v57 = vld [vmem:[%s613_s3 + $0x88] sm:$0xff]  ;;  %v38_v61 = vld [vmem:[%s613_s3 + $0x80] sm:$0xff] }
  0x15   :  { %158 = vmatpush.msra.mxu3 %v121_v35  ;;  %83 = vmatpush.msra.mxu1 %v44_v37  ;;  %v99_v58 = vld [vmem:[%s613_s3 + $0x108] sm:$0xff]  ;;  %v20_v62 = vld [vmem:[%s614_s0] sm:$0xff]  ;;  %v204_v17 = vld [vmem:[%s617_s4 + $0x10] sm:$0x3] }
  0x16   :  { %139 = vmatpush.msra.mxu2 %v104_v38  ;;  %64 = vmatpush.msra.mxu0 %v27_v40  ;;  %v115_v59 = vld [vmem:[%s613_s3 + $0x188] sm:$0xff]  ;;  %v98_v0 = vld [vmem:[%s613_s3 + $0x100] sm:$0xff]  ;;  %v314_v26 = vpop.eup %313 }
  0x17   :  { %159 = vmatpush.msra.mxu3 %v120_v39  ;;  %84 = vmatpush.msra.mxu1 %v43_v41  ;;  %v21_v63 = vld [vmem:[%s614_s0 + $0x8] sm:$0xff]  ;;  %v114_v1 = vld [vmem:[%s613_s3 + $0x180] sm:$0xff]  ;;  %v220_v27 = vmul.f32 64.0, %v314_v26  ;;  %vm224_vm3 = vweird.f32 %v314_v26 }
  0x18   :  { %140 = vmatpush.msra.mxu2 %v103_v42  ;;  %65 = vmatpush.msra.mxu0 %v26_v44  ;;  %v96_v2 = vld [vmem:[%s615_s1] sm:$0xff]  ;;  %v97_v3 = vld [vmem:[%s615_s1 + $0x8] sm:$0xff] }
  0x19   :  { %160 = vmatpush.msra.mxu3 %v119_v43  ;;  %85 = vmatpush.msra.mxu1 %v42_v45  ;;  %v172_v4 = vld [vmem:[%s613_s3 + $0x200] sm:$0xff]  ;;  %v203_v18 = vld [vmem:[%s617_s4 + $0x8] sm:$0xff]  ;;  %v221_v28 = vsub.f32 1.0, %v220_v27 }
  0x1a   :  { %141 = vmatpush.msra.mxu2 %v102_v46  ;;  %66 = vmatpush.msra.mxu0 %v25_v48  ;;  %v171_v5 = vld [vmem:[%s616_s2] sm:$0x3] }
  0x1b   :  { %161 = vmatpush.msra.mxu3 %v118_v47  ;;  %86 = vmatpush.msra.mxu1 %v41_v49  ;;  %v202_v11 = vld [vmem:[%s617_s4] sm:$0xff]  ;;  %v222_v29 = vmul.f32 %v314_v26, %v221_v28 }
  0x1c   :  { %142 = vmatpush.msra.mxu2 %v101_v50  ;;  %67 = vmatpush.msra.mxu0 %v24_v52 }
  0x1d   :  { %162 = vmatpush.msra.mxu3 %v117_v51  ;;  %87 = vmatpush.msra.mxu1 %v40_v53  ;;  %v223_v30 = vadd.f32 %v314_v26, %v222_v29 }
  0x1e   :  { %143 = vmatpush.msra.mxu2 %v100_v54  ;;  %68 = vmatpush.msra.mxu0 %v23_v56 }
  0x1f   :  { %163 = vmatpush.msra.mxu3 %v116_v55  ;;  %88 = vmatpush.msra.mxu1 %v39_v57  ;;  %v225_v31 = vsel %vm224_vm3, %v314_v26, %v223_v30 }
  0x20   :  { %144 = vmatpush.msra.mxu2 %v99_v58  ;;  %69 = vmatpush.msra.mxu0 %v22_v60 }
  0x21   :  { %164 = vmatpush.msra.mxu3 %v115_v59  ;;  %89 = vmatpush.msra.mxu1 %v38_v61 }
  0x22   :  { %70 = vmatmul.f32.vlgmr.msra.gmra.mxu0 %v20_v62  ;;  %90 = vmatmul.f32.vlgmr.msra.gmra.mxu1 %v21_v63 }
  0x23   :  { %145 = vmatpush.msra.mxu2 %v98_v0  ;;  %165 = vmatpush.msra.mxu3 %v114_v1  ;;  %v311_v0 = vld [vmem:[%s617_s4 + $0x12] ss:$0 sm:$0xff] }
  0x24   :  { %146 = vmatmul.f32.vlgmr.msra.gmra.mxu2 %v96_v2  ;;  %166 = vmatmul.f32.vlgmr.msra.gmra.mxu3 %v97_v3  ;;  %v312_v3 = vld [vmem:[%s617_s4 + $0x13] ss:$0 sm:$0xff] }
  0x25   :  { %192 = vmatpush.msrb.mxu0 %v172_v4 }
  0x2a   :  { %306 = vmatmul.msk.f32.vlgmr.msrb.gmra.mxu0 %vm173_vm0, %v171_v5  ;;  %vm300_vm0 = vcmask 517121  }
  0x9f   :  { %v71_v6 = vpop.f32.mrf.mxu0  ;;  %v91_v7 = vpop.f32.mrf.mxu1 }
  0xa0   :  { %v92_v8 = vadd.f32 %v91_v7, %v71_v6 }
  0xa2   :  { %95 = vst.msk [vmem:[#allocation2] sm:$0xff] %vm94_vm1, %v92_v8 }
  0xa7   :  { %v147_v9 = vpop.f32.mrf.mxu2  ;;  %v167_v10 = vpop.f32.mrf.mxu3 }
  0xa8   :  { %v168_v12 = vadd.f32 %v167_v10, %v147_v9  ;;  %v194_v13 = vpop.f32.mrf.mxu0 }
  0xa9   :  { %198 = vst.msk [vmem:[#allocation2 + $0x10] sm:$0x3] %vm197_vm2, %v194_v13  ;;  %v199_v14 = vld [vmem:[#allocation2] sm:$0xff] }
  0xaa   :  { %170 = vst.msk [vmem:[#allocation2 + $0x8] sm:$0xff] %vm94_vm1, %v168_v12  ;;  %v205_v15 = vadd.f32 %v202_v11, %v199_v14 }
  0xac   :  { %v210_v16 = vsel %vm94_vm1, %v205_v15, 0.0 }
  0xad   :  { %211 = vadd.xlane.f32.xlu0 %v210_v16 }
  0xb0   :  { %v201_v19 = vld [vmem:[#allocation2 + $0x10] sm:$0x3] }
  0xb1   :  { %v207_v20 = vadd.f32 %v204_v17, %v201_v19  ;;  %v200_v21 = vld [vmem:[#allocation2 + $0x8] sm:$0xff] }
  0xb2   :  { %v206_v22 = vadd.f32 %v203_v18, %v200_v21 }
  0xb3   :  { %v216_v23 = vsel %vm197_vm2, %v207_v20, 0.0 }
  0xb4   :  { %217 = vadd.xlane.f32.xlu1 %v216_v23  ;;  %v213_v24 = vsel %vm94_vm1, %v206_v22, 0.0 }
  0xb5   :  { %214 = vadd.xlane.f32.xlu0 %v213_v24 }
 0x120   :  { %v212_v32 = vpop.xlane.xlu0 %211 }
 0x121   :  { %v226_v33 = vmul.f32 %v225_v31, %v212_v32 }
 0x123   :  { %v229_v34 = vsub.f32 %v205_v15, %v226_v33 }
 0x125   :  { %v232_v35 = vmul.f32 %v229_v34, %v229_v34 }
 0x127   :  { %v235_v36 = vsel %vm94_vm1, %v232_v35, 0.0  ;;  %v218_v37 = vpop.xlane.xlu1 %217 }
 0x128   :  { %236 = vadd.xlane.f32.xlu1 %v235_v36  ;;  %v215_v38 = vpop.xlane.xlu0 %214  ;;  %v228_v40 = vmul.f32 %v225_v31, %v218_v37 }
 0x129   :  { %v227_v39 = vmul.f32 %v225_v31, %v215_v38 }
 0x12a   :  { %v578_v43 = vsub.f32 %v207_v20, %v228_v40 }
 0x12b   :  { %v230_v41 = vsub.f32 %v206_v22, %v227_v39 }
 0x12c   :  { %v234_v45 = vmul.f32 %v578_v43, %v578_v43 }
 0x12d   :  { %v233_v42 = vmul.f32 %v230_v41, %v230_v41 }
 0x12e   :  { %v241_v46 = vsel %vm197_vm2, %v234_v45, 0.0 }
 0x12f   :  { %v238_v44 = vsel %vm94_vm1, %v233_v42, 0.0 }
 0x130   :  { %239 = vadd.xlane.f32.xlu2 %v238_v44 }
 0x138   :  { %242 = vadd.xlane.f32.xlu2 %v241_v46 }
 0x19b   :  { %v237_v47 = vpop.xlane.xlu1 %236 }
 0x19c   :  { %v244_v48 = vmul.f32 %v237_v47, %v225_v31 }
 0x19e   :  { %v247_v49 = vadd.f32 1e-05, %v244_v48 }
 0x1a0   :  { %315 = vrsqrt.f32 %v247_v49  ;;  %vm256_vm5 = vweird.f32 %v247_v49 }
 0x1a3   :  { %v240_v50 = vpop.xlane.xlu2 %239 }
 0x1a4   :  { %v245_v51 = vmul.f32 %v240_v50, %v225_v31 }
 0x1a6   :  { %v316_v52 = vpop.eup %315  ;;  %v248_v53 = vadd.f32 1e-05, %v245_v51 }
 0x1a7   :  { %v251_v54 = vmul.f32 %v316_v52, %v247_v49  ;;  %vm257_vm4 = vweird.f32 %v316_v52 }
 0x1a8   :  { %317 = vrsqrt.f32 %v248_v53  ;;  %vm258_vm6 = vmor %vm256_vm5, %vm257_vm4  ;;  %vm266_vm10 = vweird.f32 %v248_v53 }
 0x1a9   :  { %v252_v55 = vmul.f32 %v316_v52, %v251_v54 }
 0x1ab   :  { %v253_v56 = vmul.f32 0.5, %v252_v55  ;;  %v243_v57 = vpop.xlane.xlu2 %242 }
 0x1ac   :  { %v246_v58 = vmul.f32 %v243_v57, %v225_v31 }
 0x1ad   :  { %v254_v59 = vsub.f32 1.5, %v253_v56 }
 0x1ae   :  { %v318_v60 = vpop.eup %317  ;;  %v249_v61 = vadd.f32 1e-05, %v246_v58 }
 0x1af   :  { %v255_v62 = vmul.f32 %v316_v52, %v254_v59  ;;  %v261_v63 = vmul.f32 %v318_v60, %v248_v53  ;;  %vm267_vm8 = vweird.f32 %v318_v60 }
 0x1b0   :  { %319 = vrsqrt.f32 %v249_v61  ;;  %vm268_vm11 = vmor %vm266_vm10, %vm267_vm8  ;;  %vm276_vm13 = vweird.f32 %v249_v61 }
 0x1b1   :  { %v259_v1 = vsel %vm258_vm6, %v316_v52, %v255_v62  ;;  %v262_v2 = vmul.f32 %v318_v60, %v261_v63 }
 0x1b2   :  { %v280_v4 = vmul.f32 %v259_v1, %v229_v34 }
 0x1b3   :  { %v263_v5 = vmul.f32 0.5, %v262_v2 }
 0x1b4   :  { %v284_v6 = vmul.f32 %v311_v0, %v280_v4 }
 0x1b5   :  { %v264_v7 = vsub.f32 1.5, %v263_v5 }
 0x1b6   :  { %v320_v8 = vpop.eup %319  ;;  %v288_v9 = vadd.f32 %v312_v3, %v284_v6 }
 0x1b7   :  { %v265_v10 = vmul.f32 %v318_v60, %v264_v7  ;;  %v271_v11 = vmul.f32 %v320_v8, %v249_v61  ;;  %vm277_vm12 = vweird.f32 %v320_v8 }
 0x1b8   :  { %292 = vst.msk [vmem:[%s618_s5] sm:$0xf] %vm291_vm7, %v288_v9  ;;  %vm278_vm14 = vmor %vm276_vm13, %vm277_vm12 }
 0x1b9   :  { %307 = vst.msk [vmem:[%s618_s5 + $0xc] sm:$0xf0] %vm297_vm9, %v288_v9  ;;  %v269_v12 = vsel %vm268_vm11, %v318_v60, %v265_v10  ;;  %v272_v13 = vmul.f32 %v320_v8, %v271_v11 }
 0x1ba   :  { %v281_v14 = vmul.f32 %v269_v12, %v230_v41 }
 0x1bb   :  { %v273_v15 = vmul.f32 0.5, %v272_v13 }
 0x1bc   :  { %v285_v16 = vmul.f32 %v311_v0, %v281_v14 }
 0x1bd   :  { %v274_v17 = vsub.f32 1.5, %v273_v15 }
 0x1be   :  { %v289_v18 = vadd.f32 %v312_v3, %v285_v16 }
 0x1bf   :  { %v275_v19 = vmul.f32 %v320_v8, %v274_v17 }
 0x1c0   :  { %293 = vst.msk [vmem:[%s618_s5 + $0x4] sm:$0xf] %vm291_vm7, %v289_v18 }
 0x1c1   :  { %308 = vst.msk [vmem:[%s618_s5 + $0x10] sm:$0xf0] %vm297_vm9, %v289_v18  ;;  %v279_v20 = vsel %vm278_vm14, %v320_v8, %v275_v19 }
 0x1c2   :  { %v282_v21 = vmul.f32 %v279_v20, %v578_v43 }
 0x1c4   :  { %v286_v22 = vmul.f32 %v311_v0, %v282_v21 }
 0x1c6   :  { %v290_v23 = vadd.f32 %v312_v3, %v286_v22 }
 0x1c8   :  { %295 = vst.msk [vmem:[%s618_s5 + $0x8] sm:$0x1] %vm294_vm15, %v290_v23 }
 0x1c9   :  { %309 = vst.msk [vmem:[%s618_s5 + $0x17] sm:$0x2] %vm300_vm0, %v290_v23 }

</bundles_post_ra>
